<compile_context>
chip_gen: v7x
topology: tpu7x:2x2x1
jax: 0.10.0
libtpu: 0.0.40
codegen_flags: <defaults>
</compile_context>

<pallas_src>
import jax
import jax.numpy as jnp
from jax.experimental import pallas as pl
from jax.experimental.pallas import tpu as pltpu

LANE = 128


def _round_up(n, m):
    return ((n + m - 1) // m) * m


def _pad2(a, rows, cols):
    """Zero-pad a 2-D array up to (rows, cols)."""
    return jnp.pad(a, ((0, rows - a.shape[0]), (0, cols - a.shape[1])))


# ---------------------------------------------------------------------------
# Fused kernel: x (and aux) -> hidden ReLU layers -> packed [mu | logvar] heads
# ---------------------------------------------------------------------------
def make_fused_kernel(num_hidden, has_aux):
    def kernel(*refs):
        out_ref = refs[-1]
        idx = 0
        x = refs[idx][...]; idx += 1                       # (TB, input_size) bf16
        if has_aux:
            aux = refs[idx][...]; idx += 1                 # (TB, aux_size)   bf16

        # --- first hidden layer: split weight avoids the misaligned concat ---
        w0x = refs[idx][...]; idx += 1                     # (input_size, H1p) bf16
        acc = jnp.dot(x, w0x, preferred_element_type=jnp.float32)
        if has_aux:
            w0a = refs[idx][...]; idx += 1                 # (aux_size, H1p) bf16
            acc = acc + jnp.dot(aux, w0a, preferred_element_type=jnp.float32)
        b0 = refs[idx][...]; idx += 1                      # (1, H1p) f32
        h = jnp.maximum(acc + b0, 0.0)                     # f32 bias/ReLU (v5e-safe)

        # --- remaining hidden layers (statically unrolled) ---
        for _ in range(num_hidden - 1):
            w = refs[idx][...]; idx += 1
            b = refs[idx][...]; idx += 1
            h = jnp.maximum(
                jnp.dot(h.astype(jnp.bfloat16), w,
                        preferred_element_type=jnp.float32) + b, 0.0)

        # --- packed heads: one MXU pass produces [mu | logvar | pad] ---
        wh = refs[idx][...]; idx += 1                      # (Hp, 2*latent padded) bf16
        bh = refs[idx][...]; idx += 1                      # (1, 2*latent padded) f32
        out = jnp.dot(h.astype(jnp.bfloat16), wh,
                      preferred_element_type=jnp.float32) + bh
        out_ref[...] = out.astype(out_ref.dtype)

    return kernel


# ---------------------------------------------------------------------------
# Parameter construction (torch.nn.Linear-like init, stored as W:(in,out))
# ---------------------------------------------------------------------------
def init_dense_encoder_params(key, input_size, layers, latent_dim, aux_size=0):
    raw = {"hidden": []}
    din = input_size + aux_size
    for width in layers:
        key, kw, kb = jax.random.split(key, 3)
        bound = 1.0 / jnp.sqrt(din)
        w = jax.random.uniform(kw, (din, width), jnp.float32, -bound, bound)
        b = jax.random.uniform(kb, (width,), jnp.float32, -bound, bound)
        raw["hidden"].append((w, b))
        din = width
    for name in ("mu", "logvar"):
        key, kw, kb = jax.random.split(key, 3)
        bound = 1.0 / jnp.sqrt(din)
        raw[name] = (
            jax.random.uniform(kw, (din, latent_dim), jnp.float32, -bound, bound),
            jax.random.uniform(kb, (latent_dim,), jnp.float32, -bound, bound),
        )
    return raw


def pack_params(raw, input_size, aux_size):
    """Zero-pad output dims to 128 lanes, cast weights to bf16, split layer-0
    weight into [x | aux] parts, and pack mu/logvar heads into one weight."""
    ops = []
    hidden = raw["hidden"]

    # layer 0: split the (input_size + aux_size, H1) weight
    w0, b0 = hidden[0]
    h1 = w0.shape[1]
    h1p = _round_up(h1, LANE)
    ops.append(_pad2(w0[:input_size], input_size, h1p).astype(jnp.bfloat16))
    if aux_size > 0:
        ops.append(_pad2(w0[input_size:], aux_size, h1p).astype(jnp.bfloat16))
    ops.append(_pad2(b0.reshape(1, -1), 1, h1p))            # f32 bias (padded cols = 0)
    prev_p = h1p

    # remaining hidden layers: pad rows to previous padded width, cols to 128
    for w, b in hidden[1:]:
        dp = _round_up(w.shape[1], LANE)
        ops.append(_pad2(w, prev_p, dp).astype(jnp.bfloat16))
        ops.append(_pad2(b.reshape(1, -1), 1, dp))
        prev_p = dp

    # packed heads: columns [0:latent] = mu, [latent:2*latent] = logvar
    w_mu, b_mu = raw["mu"]
    w_lv, b_lv = raw["logvar"]
    latent = w_mu.shape[1]
    out_w = _round_up(2 * latent, LANE)
    wh = jnp.concatenate([w_mu, w_lv], axis=1)
    bh = jnp.concatenate([b_mu, b_lv], axis=0).reshape(1, -1)
    ops.append(_pad2(wh, prev_p, out_w).astype(jnp.bfloat16))
    ops.append(_pad2(bh, 1, out_w))

    return {
        "ops": ops,
        "num_hidden": len(hidden),
        "has_aux": aux_size > 0,
        "aux_size": aux_size,
        "input_size": input_size,
        "latent_dim": latent,
        "out_width": out_w,
    }


# ---------------------------------------------------------------------------
# Batch-tile selection (all generations safe; >=2 grid steps for v7x megacore)
# ---------------------------------------------------------------------------
_TB_CAP = 512  # ~1 MiB bf16 activation block @ Din=1024; fits v5e 16 MiB scoped


def _choose_batch_tile(B):
    b16 = _round_up(B, 16)          # bf16 packs 16 rows / vreg
    if b16 <= 32:
        return b16                  # tiny batch: one whole block
    if b16 <= _TB_CAP:
        # prefer >=2 grid steps so v7x's two TensorCores both get work
        return _round_up(-(-b16 // 2), 16)
    return _TB_CAP


def _resident_spec(shape):
    """Constant-index weight/bias block: fetched once, single-buffered."""
    try:
        return pl.BlockSpec(shape, lambda i: (0, 0), pipeline_mode=pl.Buffered(1))
    except TypeError:  # older jax without pipeline_mode kwarg
        return pl.BlockSpec(shape, lambda i: (0, 0))


# ---------------------------------------------------------------------------
# Forward pass: one fused pallas_call, cdiv batch grid, resident bf16 weights
# ---------------------------------------------------------------------------
def dense_encoder_forward(packed, x, aux=None):
    B = x.shape[0]
    h = x.reshape(B, -1).astype(jnp.bfloat16)              # torch x.view(B, -1), bf16 feed
    din = h.shape[1]
    assert din == packed["input_size"]

    TB = _choose_batch_tile(B)
    Bp = _round_up(B, TB)
    grid = (Bp // TB,)
    if Bp != B:
        h = jnp.pad(h, ((0, Bp - B), (0, 0)))

    operands = [h]
    in_specs = [pl.BlockSpec((TB, din), lambda i: (i, 0))]
    if packed["has_aux"]:
        assert aux is not None
        a = aux.astype(jnp.bfloat16)
        if Bp != B:
            a = jnp.pad(a, ((0, Bp - B), (0, 0)))
        operands.append(a)
        in_specs.append(pl.BlockSpec((TB, packed["aux_size"]), lambda i: (i, 0)))
    for op in packed["ops"]:
        operands.append(op)
        in_specs.append(_resident_spec(op.shape))

    out_w = packed["out_width"]
    kernel = make_fused_kernel(packed["num_hidden"], packed["has_aux"])

    # Advisory cost estimate (padded dims, bf16 activation stream).
    weight_bytes = sum(int(o.size) * o.dtype.itemsize for o in packed["ops"])
    flops = 2 * Bp * sum(o.shape[0] * o.shape[1]
                         for o in packed["ops"] if o.dtype == jnp.bfloat16)
    act_bytes = Bp * (din + (packed["aux_size"] if packed["has_aux"] else 0)) * 2
    cost = pl.CostEstimate(flops=flops, transcendentals=0,
                           bytes_accessed=weight_bytes + act_bytes + Bp * out_w * 4)

    out = pl.pallas_call(
        kernel,
        out_shape=jax.ShapeDtypeStruct((Bp, out_w), jnp.float32),
        grid=grid,
        in_specs=in_specs,
        out_specs=pl.BlockSpec((TB, out_w), lambda i: (i, 0)),
        compiler_params=pltpu.CompilerParams(
            dimension_semantics=("parallel",),
        ),
        cost_estimate=cost,
    )(*operands)

    latent = packed["latent_dim"]
    return out[:B, :latent], out[:B, latent:2 * latent]


# ---------------------------------------------------------------------------
# Pure-JAX f32 reference (matches the PyTorch module's math exactly)
# ---------------------------------------------------------------------------
def dense_encoder_reference(raw, x, aux=None):
    h = x.reshape(x.shape[0], -1)
    if aux is not None:
        h = jnp.concatenate([h, aux], axis=-1)
    for w, b in raw["hidden"]:
        h = jnp.maximum(h @ w + b[None, :], 0.0)
    mu = h @ raw["mu"][0] + raw["mu"][1][None, :]
    logvar = h @ raw["logvar"][0] + raw["logvar"][1][None, :]
    return mu, logvar


# ---------------------------------------------------------------------------
if __name__ == "__main__":
    key = jax.random.PRNGKey(0)

    batch, channels, spatial = 2, 4, 16
    input_size = channels * spatial * spatial              # 1024 after flatten
    layers = [64, 32]
    latent_dim = 16
    aux_size = 8

    key, kx, ka, kp = jax.random.split(key, 4)
    x = jax.random.normal(kx, (batch, channels, spatial, spatial), jnp.float32)
    aux = jax.random.normal(ka, (batch, aux_size), jnp.float32)

    raw = init_dense_encoder_params(kp, input_size, layers, latent_dim, aux_size)
    packed = pack_params(raw, input_size, aux_size)

    @jax.jit
    def fwd(x_in, aux_in):
        return dense_encoder_forward(packed, x_in, aux_in)

    mu, logvar = fwd(x, aux)
    jax.block_until_ready((mu, logvar))

    mu_ref, logvar_ref = dense_encoder_reference(raw, x, aux)
    assert mu.shape == (batch, latent_dim) and logvar.shape == (batch, latent_dim)
    # bf16 matmul inputs (f32 accumulate) vs f32 reference: ~1e-2 abs error expected.
    assert jnp.allclose(mu, mu_ref, atol=3e-2, rtol=3e-2), \
        float(jnp.max(jnp.abs(mu - mu_ref)))
    assert jnp.allclose(logvar, logvar_ref, atol=3e-2, rtol=3e-2), \
        float(jnp.max(jnp.abs(logvar - logvar_ref)))

    print("KERNEL_OK")
</pallas_src>

<mosaic_0001>
module attributes {stable_mosaic.version = 11 : i64} {
  func.func @kernel(%arg0: i32, %arg1: memref<16x1024xbf16, #tpu.memory_space<vmem>>, %arg2: memref<16x8xbf16, #tpu.memory_space<vmem>>, %arg3: memref<1024x128xbf16, #tpu.memory_space<vmem>>, %arg4: memref<8x128xbf16, #tpu.memory_space<vmem>>, %arg5: memref<1x128xf32, #tpu.memory_space<vmem>>, %arg6: memref<128x128xbf16, #tpu.memory_space<vmem>>, %arg7: memref<1x128xf32, #tpu.memory_space<vmem>>, %arg8: memref<128x128xbf16, #tpu.memory_space<vmem>>, %arg9: memref<1x128xf32, #tpu.memory_space<vmem>>, %arg10: memref<16x128xf32, #tpu.memory_space<vmem>>) attributes {dimension_semantics = [#tpu.dimension_semantics<parallel>], iteration_bounds = array<i64: 1>, scalar_prefetch = 0 : i64, scratch_operands = 0 : i64, tpu.core_type = #tpu.core_type<tc>, window_params = [{transform_indices = @transform_0, window_bounds = array<i64: 16, 1024>}, {transform_indices = @transform_1, window_bounds = array<i64: 16, 8>}, {pipeline_mode = #tpu.pipeline_mode<synchronous>, transform_indices = @transform_2, window_bounds = array<i64: 1024, 128>}, {pipeline_mode = #tpu.pipeline_mode<synchronous>, transform_indices = @transform_3, window_bounds = array<i64: 8, 128>}, {pipeline_mode = #tpu.pipeline_mode<synchronous>, transform_indices = @transform_4, window_bounds = array<i64: 1, 128>}, {pipeline_mode = #tpu.pipeline_mode<synchronous>, transform_indices = @transform_5, window_bounds = array<i64: 128, 128>}, {pipeline_mode = #tpu.pipeline_mode<synchronous>, transform_indices = @transform_6, window_bounds = array<i64: 1, 128>}, {pipeline_mode = #tpu.pipeline_mode<synchronous>, transform_indices = @transform_7, window_bounds = array<i64: 128, 128>}, {pipeline_mode = #tpu.pipeline_mode<synchronous>, transform_indices = @transform_8, window_bounds = array<i64: 1, 128>}, {transform_indices = @transform_9, window_bounds = array<i64: 16, 128>}]} {
    %c0 = arith.constant 0 : index
    %c0_0 = arith.constant 0 : index
    %0 = vector.load %arg1[%c0, %c0_0] : memref<16x1024xbf16, #tpu.memory_space<vmem>>, vector<16x1024xbf16>
    %c0_1 = arith.constant 0 : index
    %c0_2 = arith.constant 0 : index
    %1 = vector.load %arg2[%c0_1, %c0_2] : memref<16x8xbf16, #tpu.memory_space<vmem>>, vector<16x8xbf16>
    %c0_3 = arith.constant 0 : index
    %c0_4 = arith.constant 0 : index
    %2 = vector.load %arg3[%c0_3, %c0_4] : memref<1024x128xbf16, #tpu.memory_space<vmem>>, vector<1024x128xbf16>
    %cst = arith.constant dense<0.000000e+00> : vector<16x128xf32>
    %3 = tpu.matmul %0, %2, %cst {dimension_numbers = #tpu.dot_dimension_numbers<[1], [0], [0], [1], [0, 0, 1, 1], [], []>} : vector<16x1024xbf16>, vector<1024x128xbf16>, vector<16x128xf32> -> vector<16x128xf32>
    %c0_5 = arith.constant 0 : index
    %c0_6 = arith.constant 0 : index
    %4 = vector.load %arg4[%c0_5, %c0_6] : memref<8x128xbf16, #tpu.memory_space<vmem>>, vector<8x128xbf16>
    %cst_7 = arith.constant dense<0.000000e+00> : vector<16x128xf32>
    %5 = tpu.matmul %1, %4, %cst_7 {dimension_numbers = #tpu.dot_dimension_numbers<[1], [0], [0], [1], [0, 0, 1, 1], [], []>} : vector<16x8xbf16>, vector<8x128xbf16>, vector<16x128xf32> -> vector<16x128xf32>
    %6 = arith.addf %3, %5 : vector<16x128xf32>
    %c0_8 = arith.constant 0 : index
    %c0_9 = arith.constant 0 : index
    %7 = vector.load %arg5[%c0_8, %c0_9] : memref<1x128xf32, #tpu.memory_space<vmem>>, vector<1x128xf32>
    %8 = vector.broadcast %7 : vector<1x128xf32> to vector<16x128xf32>
    %9 = arith.addf %6, %8 : vector<16x128xf32>
    %cst_10 = arith.constant 0.000000e+00 : f32
    %10 = vector.broadcast %cst_10 : f32 to vector<16x128xf32>
    %11 = arith.maximumf %9, %10 : vector<16x128xf32>
    %c0_11 = arith.constant 0 : index
    %c0_12 = arith.constant 0 : index
    %12 = vector.load %arg6[%c0_11, %c0_12] : memref<128x128xbf16, #tpu.memory_space<vmem>>, vector<128x128xbf16>
    %c0_13 = arith.constant 0 : index
    %c0_14 = arith.constant 0 : index
    %13 = vector.load %arg7[%c0_13, %c0_14] : memref<1x128xf32, #tpu.memory_space<vmem>>, vector<1x128xf32>
    %14 = arith.truncf %11 : vector<16x128xf32> to vector<16x128xbf16>
    %cst_15 = arith.constant dense<0.000000e+00> : vector<16x128xf32>
    %15 = tpu.matmul %14, %12, %cst_15 {dimension_numbers = #tpu.dot_dimension_numbers<[1], [0], [0], [1], [0, 0, 1, 1], [], []>} : vector<16x128xbf16>, vector<128x128xbf16>, vector<16x128xf32> -> vector<16x128xf32>
    %16 = vector.broadcast %13 : vector<1x128xf32> to vector<16x128xf32>
    %17 = arith.addf %15, %16 : vector<16x128xf32>
    %cst_16 = arith.constant 0.000000e+00 : f32
    %18 = vector.broadcast %cst_16 : f32 to vector<16x128xf32>
    %19 = arith.maximumf %17, %18 : vector<16x128xf32>
    %c0_17 = arith.constant 0 : index
    %c0_18 = arith.constant 0 : index
    %20 = vector.load %arg8[%c0_17, %c0_18] : memref<128x128xbf16, #tpu.memory_space<vmem>>, vector<128x128xbf16>
    %c0_19 = arith.constant 0 : index
    %c0_20 = arith.constant 0 : index
    %21 = vector.load %arg9[%c0_19, %c0_20] : memref<1x128xf32, #tpu.memory_space<vmem>>, vector<1x128xf32>
    %22 = arith.truncf %19 : vector<16x128xf32> to vector<16x128xbf16>
    %cst_21 = arith.constant dense<0.000000e+00> : vector<16x128xf32>
    %23 = tpu.matmul %22, %20, %cst_21 {dimension_numbers = #tpu.dot_dimension_numbers<[1], [0], [0], [1], [0, 0, 1, 1], [], []>} : vector<16x128xbf16>, vector<128x128xbf16>, vector<16x128xf32> -> vector<16x128xf32>
    %24 = vector.broadcast %21 : vector<1x128xf32> to vector<16x128xf32>
    %25 = arith.addf %23, %24 : vector<16x128xf32>
    %c0_22 = arith.constant 0 : index
    %c0_23 = arith.constant 0 : index
    %26 = vector.load %arg10[%c0_22, %c0_23] : memref<16x128xf32, #tpu.memory_space<vmem>>, vector<16x128xf32>
    tpu.vector_store %arg10[%c0_22, %c0_23], %25 {strides = array<i32>} : memref<16x128xf32, #tpu.memory_space<vmem>>, vector<16x128xf32>,
    return
  }
  func.func @transform_0(%arg0: i32) -> (i32, i32) {
    %c0_i32 = arith.constant 0 : i32
    %c0_i32_0 = arith.constant 0 : i32
    return %arg0, %c0_i32 : i32, i32
  }
  func.func @transform_1(%arg0: i32) -> (i32, i32) {
    %c0_i32 = arith.constant 0 : i32
    %c0_i32_0 = arith.constant 0 : i32
    return %arg0, %c0_i32 : i32, i32
  }
  func.func @transform_2(%arg0: i32) -> (i32, i32) {
    %c0_i32 = arith.constant 0 : i32
    %c0_i32_0 = arith.constant 0 : i32
    %c0_i32_1 = arith.constant 0 : i32
    return %c0_i32, %c0_i32_0 : i32, i32
  }
  func.func @transform_3(%arg0: i32) -> (i32, i32) {
    %c0_i32 = arith.constant 0 : i32
    %c0_i32_0 = arith.constant 0 : i32
    %c0_i32_1 = arith.constant 0 : i32
    return %c0_i32, %c0_i32_0 : i32, i32
  }
  func.func @transform_4(%arg0: i32) -> (i32, i32) {
    %c0_i32 = arith.constant 0 : i32
    %c0_i32_0 = arith.constant 0 : i32
    %c0_i32_1 = arith.constant 0 : i32
    return %c0_i32, %c0_i32_0 : i32, i32
  }
  func.func @transform_5(%arg0: i32) -> (i32, i32) {
    %c0_i32 = arith.constant 0 : i32
    %c0_i32_0 = arith.constant 0 : i32
    %c0_i32_1 = arith.constant 0 : i32
    return %c0_i32, %c0_i32_0 : i32, i32
  }
  func.func @transform_6(%arg0: i32) -> (i32, i32) {
    %c0_i32 = arith.constant 0 : i32
    %c0_i32_0 = arith.constant 0 : i32
    %c0_i32_1 = arith.constant 0 : i32
    return %c0_i32, %c0_i32_0 : i32, i32
  }
  func.func @transform_7(%arg0: i32) -> (i32, i32) {
    %c0_i32 = arith.constant 0 : i32
    %c0_i32_0 = arith.constant 0 : i32
    %c0_i32_1 = arith.constant 0 : i32
    return %c0_i32, %c0_i32_0 : i32, i32
  }
  func.func @transform_8(%arg0: i32) -> (i32, i32) {
    %c0_i32 = arith.constant 0 : i32
    %c0_i32_0 = arith.constant 0 : i32
    %c0_i32_1 = arith.constant 0 : i32
    return %c0_i32, %c0_i32_0 : i32, i32
  }
  func.func @transform_9(%arg0: i32) -> (i32, i32) {
    %c0_i32 = arith.constant 0 : i32
    %c0_i32_0 = arith.constant 0 : i32
    return %arg0, %c0_i32 : i32, i32
  }
}

</mosaic_0001>

<bundles_post_ra>
// kernel: fwd.1
= control target key start
LH: loop header
LB: loop body
LE: loop exit
PB: predicated region body
PF: predicated region fallthrough
CT: control target
= control target key end

     0   :  { %14 = vsyncpa [#allocation3], 0  ;;  %s1431_s30 = smov [#allocation2]   ;;  %s1614_s0 = inlined_call_operand.vmem [shape: bf16[16,1024], index: 0, kind: input, shape index: {}]   ;;  %s1615_s1 = inlined_call_operand.vmem [shape: bf16[16,8], index: 1, kind: input, shape index: {}]   ;;  %s1616_s2 = inlined_call_operand.hbm [shape: bf16[1024,128], index: 2, kind: input, shape index: {}]   ;;  %s1617_s3 = inlined_call_operand.vmem [shape: bf16[8,128], index: 3, kind: input, shape index: {}]   ;;  %s1618_s4 = inlined_call_operand.vmem [shape: f32[1,128], index: 4, kind: input, shape index: {}]   ;;  %s1619_s5 = inlined_call_operand.vmem [shape: bf16[128,128], index: 5, kind: input, shape index: {}]   ;;  %s1620_s6 = inlined_call_operand.vmem [shape: f32[1,128], index: 6, kind: input, shape index: {}]   ;;  %s1621_s7 = inlined_call_operand.vmem [shape: bf16[128,128], index: 7, kind: input, shape index: {}]   ;;  %s1622_s8 = inlined_call_operand.vmem [shape: f32[1,128], index: 8, kind: input, shape index: {}]   ;;  %s1623_s9 = inlined_call_operand.vmem [shape: f32[16,128], index: 9, kind: output, shape index: {}]  }
   0x1   :  { %s24_s10 = sshll.u32 %s1431_s30, 4  ;;  %s1407_s13 = scalar_lea.hbm %s1616_s2, 8192  ;;  %s25_s10 = int_to_ptr.vmem [resolvable:$true] %s24_s10 }
   0x2   :  { %p1408_p0 = scmp.ne.s32.totalorder %s1616_s2, %s1407_s13  ;;  %p1411_p1 = scmp.lt.u32.totalorder %s1407_s13, %s1616_s2 }
   0x4   :  { %p1413_p2 = pnand %p1411_p1, %p1408_p0 }
   0x6   :  { %1416 = shalt.err (!%p1413_p2)
}
   0x7   :  { %s1417_s18 = scalar_lea.vmem %s25_s10, 8192  ;;  %p1422_p4 = scmp.lt.s32.totalorder %s25_s10, %s25_s10 }
   0x8   :  { %p1418_p3 = scmp.ne.s32.totalorder %s25_s10, %s1417_s18  ;;  %p1423_p5 = scmp.lt.s32.totalorder %s1417_s18, %s1417_s18 }
   0xa   :  { %p1424_p6 = por %p1423_p5, %p1422_p4 }
   0xc   :  { %p1425_p7 = pnand %p1424_p6, %p1418_p3 }
   0xe   :  { %1428 = shalt.err (!%p1425_p7)
}
   0xf   :  { %s1432_s19 = smov 64   ;;  %s1433_s20 = smov 4  }
  0x10   :  { %30 = dma.hbm_to_vmem [thread:$0]  %s1616_s2, 8192, %s25_s10, [#allocation3], %s1432_s19, %s1432_s19, %s1433_s20  }
  0x11   :  { %1429 = dma.done.wait [#allocation3], 8192  }
  0x12   :  { %1430 = vsyncadd [#allocation3], 4294959104  ;;  %v1434_v0 = vmov 0.0   ;;  %vm1435_vm0 = vmmov 0   ;;  %vm195_vm1 = vcmask 1043456   ;;  %v1326_v3 = vld [vmem:[#allocation2 + $0x40] sm:$0xff]  }
  0x13   :  { %1275 = vmatprep.subr.bf16.mxu0 %v1434_v0  ;;  %1277 = vmatprep.mubr.msk.bf16.mxu0 %vm1435_vm0, %v1434_v0  ;;  %v185_v1 = vld [vmem:[%s1617_s3] sm:$0xf]  ;;  %vm191_vm2 = vcmask 64512   ;;  %v1331_v8 = vld [vmem:[#allocation2 + $0x48] sm:$0xff]   ;;  %v1335_v12 = vld [vmem:[#allocation2 + $0x50] sm:$0xff]  }
  0x14   :  { %v197_v2 = vsel %vm195_vm1, %v185_v1, 0  ;;  %v1327_v4 = vld [vmem:[#allocation2] sm:$0xff]   ;;  %1169 = vmatprep.subr.bf16.mxu1 %v1326_v3  ;;  %v1332_v9 = vld [vmem:[#allocation2 + $0x8] sm:$0xff]   ;;  %v1336_v13 = vld [vmem:[#allocation2 + $0x10] sm:$0xff]  }
  0x15   :  { %1276 = vmatpush3.bf16.msra.mxu0 %v197_v2  ;;  %v1328_v5 = vld [vmem:[%s1615_s1] sm:$0xff]   ;;  %1170 = vmatpush3.bf16.msra.mxu1 %v1327_v4  ;;  %v1333_v10 = vld [vmem:[#allocation2 + $0xc8] sm:$0xff]   ;;  %v1337_v14 = vld [vmem:[#allocation2 + $0xd0] sm:$0xff]  }
  0x16   :  { %v1329_v6 = vld [vmem:[#allocation2 + $0xc0] sm:$0xff]   ;;  %1171 = vmatprep.subr.bf16.mxu1 %v1331_v8  ;;  %v1334_v11 = vld [vmem:[#allocation2 + $0x88] sm:$0xff]   ;;  %v1338_v15 = vld [vmem:[#allocation2 + $0x90] sm:$0xff]  }
  0x17   :  { %v1330_v7 = vld [vmem:[#allocation2 + $0x80] sm:$0xff]   ;;  %1191 = vmatprep.subr.bf16.mxu0 %v1329_v6  ;;  %v1339_v16 = vld [vmem:[#allocation2 + $0x58] sm:$0xff]   ;;  %v1347_v24 = vld [vmem:[#allocation2 + $0x68] sm:$0xff]  }
  0x18   :  { %1278 = vmatmul.mubr.msk.bf16.vlgmr.msra.gmra.mrb[0].mxu0 %vm191_vm2, %v1328_v5  ;;  %v1340_v17 = vld [vmem:[#allocation2 + $0x18] sm:$0xff]   ;;  %v1343_v20 = vld [vmem:[#allocation2 + $0x60] sm:$0xff]   ;;  %v1348_v25 = vld [vmem:[#allocation2 + $0x28] sm:$0xff]  }
  0x19   :  { %1192 = vmatpush3.bf16.msra.mxu0 %v1330_v7  ;;  %1172 = vmatpush3.bf16.msra.mxu1 %v1332_v9  ;;  %v1341_v18 = vld [vmem:[#allocation2 + $0xd8] sm:$0xff]   ;;  %v1344_v21 = vld [vmem:[#allocation2 + $0x20] sm:$0xff]   ;;  %v1349_v26 = vld [vmem:[#allocation2 + $0xe8] sm:$0xff]  }
  0x1a   :  { %1193 = vmatprep.subr.bf16.mxu0 %v1333_v10  ;;  %1173 = vmatprep.subr.bf16.mxu1 %v1335_v12  ;;  %v1342_v19 = vld [vmem:[#allocation2 + $0x98] sm:$0xff]   ;;  %v1345_v22 = vld [vmem:[#allocation2 + $0xe0] sm:$0xff]   ;;  %v1350_v27 = vld [vmem:[#allocation2 + $0xa8] sm:$0xff]  }
  0x1b   :  { %v1346_v23 = vld [vmem:[#allocation2 + $0xa0] sm:$0xff]   ;;  %v1351_v28 = vld [vmem:[#allocation2 + $0x70] sm:$0xff]   ;;  %v1355_v32 = vld [vmem:[#allocation2 + $0x78] sm:$0xff]  }
  0x1c   :  { %v1352_v29 = vld [vmem:[#allocation2 + $0x30] sm:$0xff]   ;;  %v1356_v33 = vld [vmem:[#allocation2 + $0x38] sm:$0xff]   ;;  %v47_v35 = vld [vmem:[%s1614_s0] sm:$0xff] }
  0x1d   :  { %1194 = vmatpush3.bf16.msra.mxu0 %v1334_v11  ;;  %1174 = vmatpush3.bf16.msra.mxu1 %v1336_v13  ;;  %v1353_v30 = vld [vmem:[#allocation2 + $0xf0] sm:$0xff]   ;;  %v1357_v34 = vld [vmem:[#allocation2 + $0xf8] sm:$0xff]   ;;  %v51_v36 = vld [vmem:[%s1614_s0 + $0x20] sm:$0xff] }
  0x1e   :  { %1195 = vmatprep.subr.bf16.mxu0 %v1337_v14  ;;  %1175 = vmatprep.subr.bf16.mxu1 %v1339_v16  ;;  %v1354_v31 = vld [vmem:[#allocation2 + $0xb0] sm:$0xff]   ;;  %v1076_v37 = vcombine.low %v47_v35, %v51_v36  ;;  %v1077_v38 = vcombine.high %v47_v35, %v51_v36  ;;  %v1358_v39 = vld [vmem:[#allocation2 + $0xb8] sm:$0xff]   ;;  %v1359_v40 = vld [vmem:[#allocation2 + $0x140] sm:$0xff]  }
  0x1f   :  { %v48_v41 = vld [vmem:[%s1614_s0 + $0x8] sm:$0xff]  ;;  %v1360_v45 = vld [vmem:[#allocation2 + $0x100] sm:$0xff]   ;;  %v1367_v52 = vld [vmem:[#allocation2 + $0x150] sm:$0xff]  }
  0x20   :  { %696 = vmatprep.mubr.bf16.mxu1 %v1077_v38  ;;  %v52_v42 = vld [vmem:[%s1614_s0 + $0x28] sm:$0xff]  ;;  %v1361_v46 = vld [vmem:[#allocation2 + $0x1c0] sm:$0xff]   ;;  %v1368_v53 = vld [vmem:[#allocation2 + $0x110] sm:$0xff]  }
  0x21   :  { %1196 = vmatpush3.bf16.msra.mxu0 %v1338_v15  ;;  %1176 = vmatpush3.bf16.msra.mxu1 %v1340_v17  ;;  %v1078_v43 = vcombine.low %v48_v41, %v52_v42  ;;  %v1079_v44 = vcombine.high %v48_v41, %v52_v42  ;;  %v1362_v47 = vld [vmem:[#allocation2 + $0x180] sm:$0xff]   ;;  %v1363_v48 = vld [vmem:[#allocation2 + $0x148] sm:$0xff]   ;;  %v1369_v54 = vld [vmem:[#allocation2 + $0x1d0] sm:$0xff]  }
  0x22   :  { %1197 = vmatprep.subr.bf16.mxu0 %v1341_v18  ;;  %1177 = vmatprep.subr.bf16.mxu1 %v1343_v20  ;;  %v1364_v49 = vld [vmem:[#allocation2 + $0x108] sm:$0xff]   ;;  %v1370_v55 = vld [vmem:[#allocation2 + $0x190] sm:$0xff]   ;;  %v1371_v56 = vld [vmem:[#allocation2 + $0x158] sm:$0xff]  }
  0x23   :  { %737 = vmatprep.mubr.bf16.mxu0 %v1079_v44  ;;  %v1365_v50 = vld [vmem:[#allocation2 + $0x1c8] sm:$0xff]   ;;  %v1372_v57 = vld [vmem:[#allocation2 + $0x118] sm:$0xff]   ;;  %v1375_v60 = vld [vmem:[#allocation2 + $0x160] sm:$0xff]  }
  0x24   :  { %v1366_v51 = vld [vmem:[#allocation2 + $0x188] sm:$0xff]   ;;  %v1373_v58 = vld [vmem:[#allocation2 + $0x1d8] sm:$0xff]   ;;  %v1376_v61 = vld [vmem:[#allocation2 + $0x120] sm:$0xff]  }
  0x25   :  { %1198 = vmatpush3.bf16.msra.mxu0 %v1342_v19  ;;  %1178 = vmatpush3.bf16.msra.mxu1 %v1344_v21  ;;  %v1374_v59 = vld [vmem:[#allocation2 + $0x198] sm:$0xff]   ;;  %v1377_v62 = vld [vmem:[#allocation2 + $0x1e0] sm:$0xff]   ;;  %v1379_v1 = vld [vmem:[#allocation2 + $0x168] sm:$0xff]  }
  0x26   :  { %1199 = vmatprep.subr.bf16.mxu0 %v1345_v22  ;;  %1179 = vmatprep.subr.bf16.mxu1 %v1347_v24  ;;  %v1378_v63 = vld [vmem:[#allocation2 + $0x1a0] sm:$0xff]   ;;  %v1380_v2 = vld [vmem:[#allocation2 + $0x128] sm:$0xff]   ;;  %v1383_v5 = vld [vmem:[#allocation2 + $0x170] sm:$0xff]  }
  0x27   :  { %v1381_v3 = vld [vmem:[#allocation2 + $0x1e8] sm:$0xff]   ;;  %v1384_v6 = vld [vmem:[#allocation2 + $0x130] sm:$0xff]   ;;  %v1387_v9 = vld [vmem:[#allocation2 + $0x178] sm:$0xff]  }
  0x28   :  { %v1382_v4 = vld [vmem:[#allocation2 + $0x1a8] sm:$0xff]   ;;  %v1385_v7 = vld [vmem:[#allocation2 + $0x1f0] sm:$0xff]   ;;  %v1388_v10 = vld [vmem:[#allocation2 + $0x138] sm:$0xff]  }
  0x29   :  { %1200 = vmatpush3.bf16.msra.mxu0 %v1346_v23  ;;  %1180 = vmatpush3.bf16.msra.mxu1 %v1348_v25  ;;  %v1386_v8 = vld [vmem:[#allocation2 + $0x1b0] sm:$0xff]   ;;  %v1389_v11 = vld [vmem:[#allocation2 + $0x1f8] sm:$0xff]   ;;  %v1391_v21 = vld [vmem:[%s1619_s5] sm:$0xff]  }
  0x2a   :  { %1201 = vmatprep.subr.bf16.mxu0 %v1349_v26  ;;  %1181 = vmatprep.subr.bf16.mxu1 %v1351_v28  ;;  %v49_v12 = vld [vmem:[%s1614_s0 + $0x10] sm:$0xff]  ;;  %v1390_v16 = vld [vmem:[#allocation2 + $0x1b8] sm:$0xff]   ;;  %v1392_v22 = vld [vmem:[%s1619_s5 + $0x8] sm:$0xff]  }
  0x2b   :  { %v53_v13 = vld [vmem:[%s1614_s0 + $0x30] sm:$0xff]  ;;  %v50_v17 = vld [vmem:[%s1614_s0 + $0x18] sm:$0xff]  ;;  %v1395_v25 = vld [vmem:[%s1619_s5 + $0x20] sm:$0xff]  }
  0x2c   :  { %v1080_v14 = vcombine.low %v49_v12, %v53_v13  ;;  %v1081_v15 = vcombine.high %v49_v12, %v53_v13  ;;  %v54_v18 = vld [vmem:[%s1614_s0 + $0x38] sm:$0xff]  ;;  %v1393_v23 = vld [vmem:[%s1619_s5 + $0x10] sm:$0xff]   ;;  %v1396_v26 = vld [vmem:[%s1619_s5 + $0x28] sm:$0xff]  }
  0x2d   :  { %1202 = vmatpush3.bf16.msra.mxu0 %v1350_v27  ;;  %1182 = vmatpush3.bf16.msra.mxu1 %v1352_v29  ;;  %v1082_v19 = vcombine.low %v50_v17, %v54_v18  ;;  %v1083_v20 = vcombine.high %v50_v17, %v54_v18  ;;  %v1394_v24 = vld [vmem:[%s1619_s5 + $0x18] sm:$0xff]   ;;  %v1397_v27 = vld [vmem:[%s1619_s5 + $0x30] sm:$0xff]   ;;  %v1399_v29 = vld [vmem:[%s1621_s7] sm:$0xff]  }
  0x2e   :  { %1203 = vmatprep.subr.bf16.mxu0 %v1353_v30  ;;  %1183 = vmatprep.subr.bf16.mxu1 %v1355_v32  ;;  %v1398_v28 = vld [vmem:[%s1619_s5 + $0x38] sm:$0xff]   ;;  %v1400_v30 = vld [vmem:[%s1621_s7 + $0x8] sm:$0xff]  }
  0x2f   :  { %v1402_v32 = vld [vmem:[%s1621_s7 + $0x18] sm:$0xff]  }
  0x31   :  { %1204 = vmatpush3.bf16.msra.mxu0 %v1354_v31  ;;  %1184 = vmatpush3.bf16.msra.mxu1 %v1356_v33  ;;  %v1401_v31 = vld [vmem:[%s1621_s7 + $0x10] sm:$0xff]   ;;  %v1403_v33 = vld [vmem:[%s1621_s7 + $0x20] sm:$0xff]  }
  0x32   :  { %1205 = vmatprep.subr.bf16.mxu0 %v1357_v34  ;;  %1213 = vmatprep.subr.bf16.mxu1 %v1359_v40  ;;  %v1404_v34 = vld [vmem:[%s1621_s7 + $0x28] sm:$0xff]  }
  0x34   :  { %697 = vmatmul.mubr.bf16.vlgmr.msra.gmra.mrb[0].mxu1 %v1076_v37 }
  0x35   :  { %1206 = vmatpush3.bf16.msra.mxu0 %v1358_v39  ;;  %1214 = vmatpush3.bf16.msra.mxu1 %v1360_v45 }
  0x36   :  { %1235 = vmatprep.subr.bf16.mxu0 %v1361_v46  ;;  %1215 = vmatprep.subr.bf16.mxu1 %v1363_v48 }
  0x37   :  { %778 = vmatprep.mubr.bf16.mxu1 %v1081_v15  ;;  %v1406_v15 = vld [vmem:[%s1621_s7 + $0x38] sm:$0xff]  }
  0x38   :  { %738 = vmatmul.mubr.bf16.vlgmr.msra.gmra.mrb[4].mxu0 %v1078_v43 }
  0x39   :  { %1236 = vmatpush3.bf16.msra.mxu0 %v1362_v47  ;;  %1216 = vmatpush3.bf16.msra.mxu1 %v1364_v49 }
  0x3a   :  { %1237 = vmatprep.subr.bf16.mxu0 %v1365_v50  ;;  %1217 = vmatprep.subr.bf16.mxu1 %v1367_v52 }
  0x3b   :  { %819 = vmatprep.mubr.bf16.mxu0 %v1083_v20 }
  0x3d   :  { %1238 = vmatpush3.bf16.msra.mxu0 %v1366_v51  ;;  %1218 = vmatpush3.bf16.msra.mxu1 %v1368_v53 }
  0x3e   :  { %1239 = vmatprep.subr.bf16.mxu0 %v1369_v54  ;;  %1219 = vmatprep.subr.bf16.mxu1 %v1371_v56 }
  0x41   :  { %1240 = vmatpush3.bf16.msra.mxu0 %v1370_v55  ;;  %1220 = vmatpush3.bf16.msra.mxu1 %v1372_v57 }
  0x42   :  { %1241 = vmatprep.subr.bf16.mxu0 %v1373_v58  ;;  %1221 = vmatprep.subr.bf16.mxu1 %v1375_v60 }
  0x45   :  { %1242 = vmatpush3.bf16.msra.mxu0 %v1374_v59  ;;  %1222 = vmatpush3.bf16.msra.mxu1 %v1376_v61 }
  0x46   :  { %1243 = vmatprep.subr.bf16.mxu0 %v1377_v62  ;;  %1223 = vmatprep.subr.bf16.mxu1 %v1379_v1 }
  0x49   :  { %1244 = vmatpush3.bf16.msra.mxu0 %v1378_v63  ;;  %1224 = vmatpush3.bf16.msra.mxu1 %v1380_v2 }
  0x4a   :  { %1245 = vmatprep.subr.bf16.mxu0 %v1381_v3  ;;  %1225 = vmatprep.subr.bf16.mxu1 %v1383_v5  ;;  %v1148_v3 = vld [vmem:[%s1618_s4] ss:$0 sm:$0xff] }
  0x4d   :  { %1246 = vmatpush3.bf16.msra.mxu0 %v1382_v4  ;;  %1226 = vmatpush3.bf16.msra.mxu1 %v1384_v6 }
  0x4e   :  { %1247 = vmatprep.subr.bf16.mxu0 %v1385_v7  ;;  %1227 = vmatprep.subr.bf16.mxu1 %v1387_v9 }
  0x51   :  { %1248 = vmatpush3.bf16.msra.mxu0 %v1386_v8  ;;  %1228 = vmatpush3.bf16.msra.mxu1 %v1388_v10 }
  0x52   :  { %1249 = vmatprep.subr.bf16.mxu0 %v1389_v11  ;;  %1281 = vmatprep.subr.bf16.mxu1 %v1434_v0 }
  0x54   :  { %779 = vmatmul.mubr.bf16.vlgmr.msra.gmra.mrb[4].mxu1 %v1080_v14  ;;  %v1405_v14 = vld [vmem:[%s1621_s7 + $0x30] sm:$0xff]  }
  0x55   :  { %1250 = vmatpush3.bf16.msra.mxu0 %v1390_v16  ;;  %1297 = vmatprep.mubr.msk.bf16.mxu1 %vm1435_vm0, %v1434_v0  ;;  %v1149_v16 = vld [vmem:[%s1620_s6] ss:$0 sm:$0xff] }
  0x56   :  { %1301 = vmatprep.subr.bf16.mxu0 %v1434_v0  ;;  %1282 = vmatpush3.bf16.msra.mxu1 %v1391_v21 }
  0x57   :  { %1283 = vmatprep.subr.bf16.mxu1 %v1434_v0 }
  0x58   :  { %820 = vmatmul.mubr.bf16.vlgmr.msra.gmra.mrb[8].mxu0 %v1082_v19 }
  0x59   :  { %1317 = vmatprep.mubr.msk.bf16.mxu0 %vm1435_vm0, %v1434_v0  ;;  %1302 = vmatpush3.bf16.msra.mxu0 %v1399_v29 }
  0x5a   :  { %1284 = vmatpush3.bf16.msra.mxu1 %v1392_v22  ;;  %1303 = vmatprep.subr.bf16.mxu0 %v1434_v0 }
  0x5b   :  { %1285 = vmatprep.subr.bf16.mxu1 %v1434_v0 }
  0x5d   :  { %1304 = vmatpush3.bf16.msra.mxu0 %v1400_v30 }
  0x5e   :  { %1286 = vmatpush3.bf16.msra.mxu1 %v1393_v23  ;;  %1305 = vmatprep.subr.bf16.mxu0 %v1434_v0 }
  0x5f   :  { %1287 = vmatprep.subr.bf16.mxu1 %v1434_v0 }
  0x61   :  { %1306 = vmatpush3.bf16.msra.mxu0 %v1401_v31 }
  0x62   :  { %1288 = vmatpush3.bf16.msra.mxu1 %v1394_v24  ;;  %1307 = vmatprep.subr.bf16.mxu0 %v1434_v0 }
  0x63   :  { %1289 = vmatprep.subr.bf16.mxu1 %v1434_v0 }
  0x65   :  { %1308 = vmatpush3.bf16.msra.mxu0 %v1402_v32 }
  0x66   :  { %1290 = vmatpush3.bf16.msra.mxu1 %v1395_v25  ;;  %1309 = vmatprep.subr.bf16.mxu0 %v1434_v0 }
  0x67   :  { %1291 = vmatprep.subr.bf16.mxu1 %v1434_v0 }
  0x69   :  { %1310 = vmatpush3.bf16.msra.mxu0 %v1403_v33 }
  0x6a   :  { %1292 = vmatpush3.bf16.msra.mxu1 %v1396_v26  ;;  %1311 = vmatprep.subr.bf16.mxu0 %v1434_v0 }
  0x6b   :  { %1293 = vmatprep.subr.bf16.mxu1 %v1434_v0 }
  0x6d   :  { %1312 = vmatpush3.bf16.msra.mxu0 %v1404_v34 }
  0x6e   :  { %1294 = vmatpush3.bf16.msra.mxu1 %v1397_v27  ;;  %1313 = vmatprep.subr.bf16.mxu0 %v1434_v0 }
  0x6f   :  { %1295 = vmatprep.subr.bf16.mxu1 %v1434_v0 }
  0x71   :  { %1314 = vmatpush3.bf16.msra.mxu0 %v1405_v14 }
  0x72   :  { %1296 = vmatpush3.bf16.msra.mxu1 %v1398_v28  ;;  %1315 = vmatprep.subr.bf16.mxu0 %v1434_v0  ;;  %v1158_v0 = vld [vmem:[%s1622_s8] ss:$0 sm:$0xff] }
  0x75   :  { %1316 = vmatpush3.bf16.msra.mxu0 %v1406_v15 }
  0xeb   :  { %v233_v35 = vpop.f32.mrb[0].mxu0 }
  0xec   :  { %v1279_v36 = vpop.f32.mrb[1].mxu0 }
  0xed   :  { %v236_v37 = vpop.f32.mrb[2].mxu0 }
  0xee   :  { %v1280_v38 = vpop.f32.mrb[3].mxu0 }
 0x107   :  { %v1185_v39 = vpop.f32.mrb[0].mxu1 }
 0x108   :  { %v1186_v40 = vpop.f32.mrb[1].mxu1 }
 0x109   :  { %v1187_v41 = vadd.f32 %v1186_v40, %v1185_v39  ;;  %v1188_v42 = vpop.f32.mrb[2].mxu1 }
 0x10a   :  { %v1189_v44 = vpop.f32.mrb[3].mxu1 }
 0x10b   :  { %v1207_v43 = vpop.f32.mrb[4].mxu0  ;;  %v699_v45 = vadd.f32 %v1187_v41, %v233_v35  ;;  %v1190_v46 = vadd.f32 %v1189_v44, %v1188_v42 }
 0x10c   :  { %v1208_v47 = vpop.f32.mrb[5].mxu0 }
 0x10d   :  { %v1209_v48 = vadd.f32 %v1208_v47, %v1207_v43  ;;  %v1210_v49 = vpop.f32.mrb[6].mxu0  ;;  %v702_v50 = vadd.f32 %v1190_v46, %v236_v37 }
 0x10e   :  { %v1211_v51 = vpop.f32.mrb[7].mxu0 }
 0x10f   :  { %v740_v52 = vadd.f32 %v1209_v48, %v699_v45  ;;  %v1212_v53 = vadd.f32 %v1211_v51, %v1210_v49 }
 0x111   :  { %v743_v54 = vadd.f32 %v1212_v53, %v702_v50 }
 0x127   :  { %v1229_v55 = vpop.f32.mrb[4].mxu1 }
 0x128   :  { %v1230_v56 = vpop.f32.mrb[5].mxu1 }
 0x129   :  { %v1231_v57 = vadd.f32 %v1230_v56, %v1229_v55  ;;  %v1232_v58 = vpop.f32.mrb[6].mxu1 }
 0x12a   :  { %v1233_v60 = vpop.f32.mrb[7].mxu1 }
 0x12b   :  { %v1251_v59 = vpop.f32.mrb[8].mxu0  ;;  %v781_v62 = vadd.f32 %v1231_v57, %v740_v52  ;;  %v1234_v63 = vadd.f32 %v1233_v60, %v1232_v58 }
 0x12c   :  { %v1252_v61 = vpop.f32.mrb[9].mxu0 }
 0x12d   :  { %v1253_v1 = vadd.f32 %v1252_v61, %v1251_v59  ;;  %v1254_v2 = vpop.f32.mrb[10].mxu0  ;;  %v784_v5 = vadd.f32 %v1234_v63, %v743_v54 }
 0x12e   :  { %v1255_v4 = vpop.f32.mrb[11].mxu0 }
 0x12f   :  { %v822_v6 = vadd.f32 %v1253_v1, %v781_v62  ;;  %v1256_v7 = vadd.f32 %v1255_v4, %v1254_v2 }
 0x131   :  { %v835_v8 = vadd.f32 %v1148_v3, %v822_v6  ;;  %v825_v9 = vadd.f32 %v1256_v7, %v784_v5 }
 0x133   :  { %v836_v10 = vadd.f32 %v1148_v3, %v825_v9  ;;  %v837_v11 = vmax.f32 %v835_v8, 0.0 }
 0x135   :  { %v838_v12 = vmax.f32 %v836_v10, 0.0 }
 0x137   :  { %v856_v13 = vpack.c.bf16 %v838_v12, %v837_v11 }
 0x139   :  { %1298 = vmatmul.mubr.bf16.vlgmr.msra.gmra.mrb[8].mxu1 %v856_v13 }
 0x20c   :  { %v945_v17 = vpop.f32.mrb[8].mxu1 }
 0x20d   :  { %v946_v18 = vadd.f32 %v1149_v16, %v945_v17  ;;  %v1299_v19 = vpop.f32.mrb[9].mxu1 }
 0x20e   :  { %v948_v20 = vpop.f32.mrb[10].mxu1 }
 0x20f   :  { %v949_v21 = vadd.f32 %v1149_v16, %v948_v20  ;;  %v1300_v22 = vpop.f32.mrb[11].mxu1  ;;  %v952_v23 = vmax.f32 %v946_v18, 0.0 }
 0x211   :  { %v953_v24 = vmax.f32 %v949_v21, 0.0 }
 0x213   :  { %v971_v25 = vpack.c.bf16 %v953_v24, %v952_v23 }
 0x215   :  { %1318 = vmatmul.mubr.bf16.vlgmr.msra.gmra.mrb[12].mxu0 %v971_v25 }
 0x2e8   :  { %v1060_v26 = vpop.f32.mrb[12].mxu0 }
 0x2e9   :  { %v1061_v27 = vadd.f32 %v1158_v0, %v1060_v26  ;;  %v1319_v28 = vpop.f32.mrb[13].mxu0 }
 0x2ea   :  { %v1063_v29 = vpop.f32.mrb[14].mxu0 }
 0x2eb   :  { %1067 = vst [vmem:[%s1623_s9] sm:$0xff] %v1061_v27  ;;  %v1064_v30 = vadd.f32 %v1158_v0, %v1063_v29  ;;  %v1320_v31 = vpop.f32.mrb[15].mxu0 }
 0x2ed   :  { %1068 = vst [vmem:[%s1623_s9 + $0x8] sm:$0xff] %v1064_v30 }
 0x2ee   :  { %1073 = vsyncpa [#allocation3], 1 }

</bundles_post_ra>
